<compile_context>
chip_gen: v6e
topology: v6e:2x2x1
jax: 0.10.0
libtpu: 0.0.40
codegen_flags: <defaults>
</compile_context>

<pallas_src>
import functools

import jax
import jax.numpy as jnp
from jax.experimental import pallas as pl
from jax.experimental.pallas import tpu as pltpu


# --------------------------------------------------------------------------- #
# Kernel                                                                      #
# --------------------------------------------------------------------------- #
def _dynamics_kernel(x_ref, w1_ref, b1_ref, w2_ref, b2_ref, w3_ref, b3_ref,
                     w4_ref, b4_ref, out_ref, acc_ref, *, inv_length):
    """One (batch_tile, length_tile) grid step.

    x_ref:   (TB, TL, C)   channels-last activation tile (streamed)
    w*/b*:   resident weights (C_in, C_out) / biases (1, C_out)
    out_ref: (TB, S)       written only at the last length tile
    acc_ref: (TB, 3C) f32  running sum over the length axis
    """
    l = pl.program_id(1)

    @pl.when(l == 0)
    def _init():
        acc_ref[...] = jnp.zeros_like(acc_ref)

    tb, tl, c_in = x_ref.shape
    # Flatten (TB, TL) -> rows so the MXU sees a single dense M = TB*TL matmul
    # per layer (TL is a multiple of 8, so this reshape is layout-trivial).
    h = x_ref[...].reshape(tb * tl, c_in)

    h = jnp.dot(h, w1_ref[...], preferred_element_type=jnp.float32) + b1_ref[...]
    h = jnp.maximum(h, 0.0)
    h = jnp.dot(h, w2_ref[...], preferred_element_type=jnp.float32) + b2_ref[...]
    h = jnp.maximum(h, 0.0)
    h = jnp.dot(h, w3_ref[...], preferred_element_type=jnp.float32) + b3_ref[...]
    h = jnp.maximum(h, 0.0)                               # (TB*TL, 3C)

    # Partial sum over this length tile (mean is hoisted past the last linear).
    acc_ref[...] += jnp.sum(h.reshape(tb, tl, -1), axis=1)

    @pl.when(l == pl.num_programs(1) - 1)
    def _finalize():
        pooled = acc_ref[...] * inv_length                # (TB, 3C) == mean over L
        out = (jnp.dot(pooled, w4_ref[...], preferred_element_type=jnp.float32)
               + b4_ref[...])                             # (TB, S)
        out_ref[...] = out.astype(out_ref.dtype)


# --------------------------------------------------------------------------- #
# Tiling helpers                                                              #
# --------------------------------------------------------------------------- #
def _pick_length_tile(length, max_rows=512):
    """Length tile that divides L; multiples of 128 for long L, else full L."""
    if length <= max_rows:
        return length
    for cand in (512, 384, 256, 128):
        if length % cand == 0:
            return cand
    # TODO(synk): ragged long L (not a multiple of 128) falls back to a single
    # full-length tile; a BoundedSlice spec would handle this more gracefully.
    return length


def _pick_batch_tile(batch, length_tile, max_rows=1024):
    """Batch tile: whole batch, or a multiple-of-8 divisor so the (TB, S)
    output block satisfies the sublane rule."""
    cap = max(1, max_rows // max(length_tile, 1))
    if batch <= cap:
        return batch
    cand = (cap // 8) * 8
    while cand >= 8:
        if batch % cand == 0:
            return cand
        cand -= 8
    return batch


# --------------------------------------------------------------------------- #
# Wrapper                                                                     #
# --------------------------------------------------------------------------- #
def dynamics_network_forward(x_ncl, params, *, channels_last=False):
    """Forward pass. `x_ncl` is (B, num_channels, L) like the PyTorch input.

    Pass `channels_last=True` with a (B, L, C) array to skip the layout
    transpose (the transpose is pure extra HBM traffic for this kernel).
    Returns (B, full_support_size) float32.
    """
    if channels_last:
        x = x_ncl                                   # (B, L, C)
    else:
        # TODO(synk): callers that can produce channels-last input should pass
        # it directly; this standalone transpose costs one extra HBM round trip.
        x = jnp.transpose(x_ncl, (0, 2, 1))         # (B, L, C)

    B, L, C = x.shape
    c2 = params['w1'].shape[1]
    c3 = params['w2'].shape[1]
    hidden = params['w3'].shape[1]                  # 3C
    S = params['w4'].shape[1]

    TL = _pick_length_tile(L)
    TB = _pick_batch_tile(B, TL)
    grid = (B // TB, L // TL)

    def keep(i, l):                                 # resident operand
        return (0, 0)

    in_specs = [
        pl.BlockSpec((TB, TL, C), lambda i, l: (i, l, 0)),      # streamed x tile
        pl.BlockSpec(params['w1'].shape, keep),
        pl.BlockSpec(params['b1'].shape, keep),
        pl.BlockSpec(params['w2'].shape, keep),
        pl.BlockSpec(params['b2'].shape, keep),
        pl.BlockSpec(params['w3'].shape, keep),
        pl.BlockSpec(params['b3'].shape, keep),
        pl.BlockSpec(params['w4'].shape, keep),
        pl.BlockSpec(params['b4'].shape, keep),
    ]
    out_spec = pl.BlockSpec((TB, S), lambda i, l: (i, 0))

    flops = 2 * B * L * (C * c2 + c2 * c3 + c3 * hidden) + 2 * B * hidden * S
    bytes_accessed = (x.size * x.dtype.itemsize
                      + sum(int(p.size) * p.dtype.itemsize for p in params.values())
                      + B * S * 4)

    kernel = functools.partial(_dynamics_kernel, inv_length=1.0 / L)

    return pl.pallas_call(
        kernel,
        out_shape=jax.ShapeDtypeStruct((B, S), jnp.float32),
        grid=grid,
        in_specs=in_specs,
        out_specs=out_spec,
        scratch_shapes=[pltpu.VMEM((TB, hidden), jnp.float32)],
        compiler_params=pltpu.CompilerParams(
            dimension_semantics=("parallel", "arbitrary")),
        cost_estimate=pl.CostEstimate(
            flops=flops, transcendentals=0, bytes_accessed=bytes_accessed),
    )(x, params['w1'], params['b1'], params['w2'], params['b2'],
      params['w3'], params['b3'], params['w4'], params['b4'])


# --------------------------------------------------------------------------- #
# Params / reference                                                          #
# --------------------------------------------------------------------------- #
def init_params(key, num_channels, full_support_size, dtype=jnp.float32):
    """Init matching mlp([C, 2C, 3C, 3C, S]) Conv1d(k=1) weight shapes."""
    dims = [num_channels, 2 * num_channels, 3 * num_channels,
            3 * num_channels, full_support_size]
    params = {}
    for i in range(1, len(dims)):
        cin, cout = dims[i - 1], dims[i]
        key, kw, kb = jax.random.split(key, 3)
        bound = 1.0 / (cin ** 0.5)          # PyTorch uniform fan-in init
        params[f'w{i}'] = jax.random.uniform(kw, (cin, cout), dtype, -bound, bound)
        params[f'b{i}'] = jax.random.uniform(kb, (1, cout), dtype, -bound, bound)
    return params


def reference_forward(x_ncl, params):
    """Pure-JAX reference of the PyTorch forward."""
    h = jnp.transpose(x_ncl, (0, 2, 1)).astype(jnp.float32)
    for i in range(1, 5):
        h = h @ params[f'w{i}'].astype(jnp.float32) + params[f'b{i}'].astype(jnp.float32)
        if i < 4:
            h = jnp.maximum(h, 0.0)
    return jnp.mean(h, axis=1)


# --------------------------------------------------------------------------- #
# Main                                                                        #
# --------------------------------------------------------------------------- #
if __name__ == "__main__":
    key = jax.random.PRNGKey(0)
    B, C, L, S = 2, 32, 16, 16          # batch, num_channels, seq length, support
    kx, kp = jax.random.split(key)

    x = jax.random.normal(kx, (B, C, L), jnp.float32)   # PyTorch-style NCL input
    params = init_params(kp, num_channels=C, full_support_size=S)

    out = jax.block_until_ready(dynamics_network_forward(x, params))
    ref = reference_forward(x, params)

    assert out.shape == (B, S), out.shape
    err = float(jnp.max(jnp.abs(out - ref)))
    scale = float(jnp.max(jnp.abs(ref))) + 1.0
    # Mean-before-final-linear + tiled accumulation reorder float sums -> 1e-3 tol.
    assert err < 1e-3 * scale, f"mismatch vs reference: {err}"

    print("KERNEL_OK")
</pallas_src>

<mosaic_0001>
module attributes {stable_mosaic.version = 11 : i64} {
  func.func @_dynamics_kernel(%arg0: i32, %arg1: i32, %arg2: memref<2x16x32xf32, #tpu.memory_space<vmem>>, %arg3: memref<32x64xf32, #tpu.memory_space<vmem>>, %arg4: memref<1x64xf32, #tpu.memory_space<vmem>>, %arg5: memref<64x96xf32, #tpu.memory_space<vmem>>, %arg6: memref<1x96xf32, #tpu.memory_space<vmem>>, %arg7: memref<96x96xf32, #tpu.memory_space<vmem>>, %arg8: memref<1x96xf32, #tpu.memory_space<vmem>>, %arg9: memref<96x16xf32, #tpu.memory_space<vmem>>, %arg10: memref<1x16xf32, #tpu.memory_space<vmem>>, %arg11: memref<2x16xf32, #tpu.memory_space<vmem>>, %arg12: memref<2x96xf32, #tpu.memory_space<vmem>>) attributes {dimension_semantics = [#tpu.dimension_semantics<parallel>, #tpu.dimension_semantics<arbitrary>], iteration_bounds = array<i64: 1, 1>, scalar_prefetch = 0 : i64, scratch_operands = 1 : i64, tpu.core_type = #tpu.core_type<tc>, window_params = [{transform_indices = @transform_0, window_bounds = array<i64: 2, 16, 32>}, {pipeline_mode = #tpu.pipeline_mode<synchronous>, transform_indices = @transform_1, window_bounds = array<i64: 32, 64>}, {pipeline_mode = #tpu.pipeline_mode<synchronous>, transform_indices = @transform_2, window_bounds = array<i64: 1, 64>}, {pipeline_mode = #tpu.pipeline_mode<synchronous>, transform_indices = @transform_3, window_bounds = array<i64: 64, 96>}, {pipeline_mode = #tpu.pipeline_mode<synchronous>, transform_indices = @transform_4, window_bounds = array<i64: 1, 96>}, {pipeline_mode = #tpu.pipeline_mode<synchronous>, transform_indices = @transform_5, window_bounds = array<i64: 96, 96>}, {pipeline_mode = #tpu.pipeline_mode<synchronous>, transform_indices = @transform_6, window_bounds = array<i64: 1, 96>}, {pipeline_mode = #tpu.pipeline_mode<synchronous>, transform_indices = @transform_7, window_bounds = array<i64: 96, 16>}, {pipeline_mode = #tpu.pipeline_mode<synchronous>, transform_indices = @transform_8, window_bounds = array<i64: 1, 16>}, {transform_indices = @transform_9, window_bounds = array<i64: 2, 16>}]} {
    %c0_i32 = arith.constant 0 : i32
    %0 = arith.cmpi eq, %arg1, %c0_i32 : i32
    %1 = arith.extui %0 : i1 to i32
    %c0_i32_0 = arith.constant 0 : i32
    %2 = arith.cmpi ne, %1, %c0_i32_0 : i32
    scf.if %2 {
      %cst_27 = arith.constant 0.000000e+00 : f32
      %34 = vector.broadcast %cst_27 : f32 to vector<2x96xf32>
      %c0_28 = arith.constant 0 : index
      %c0_29 = arith.constant 0 : index
      %35 = vector.load %arg12[%c0_28, %c0_29] : memref<2x96xf32, #tpu.memory_space<vmem>>, vector<2x96xf32>
      tpu.vector_store %arg12[%c0_28, %c0_29], %34 {strides = array<i32>} : memref<2x96xf32, #tpu.memory_space<vmem>>, vector<2x96xf32>,
    } else {
    }
    %c0 = arith.constant 0 : index
    %c0_1 = arith.constant 0 : index
    %c0_2 = arith.constant 0 : index
    %3 = vector.load %arg2[%c0, %c0_1, %c0_2] : memref<2x16x32xf32, #tpu.memory_space<vmem>>, vector<2x16x32xf32>
    %4 = vector.shape_cast %3 : vector<2x16x32xf32> to vector<32x32xf32>
    %c0_3 = arith.constant 0 : index
    %c0_4 = arith.constant 0 : index
    %5 = vector.load %arg3[%c0_3, %c0_4] : memref<32x64xf32, #tpu.memory_space<vmem>>, vector<32x64xf32>
    %cst = arith.constant dense<0.000000e+00> : vector<32x64xf32>
    %6 = tpu.matmul %4, %5, %cst {dimension_numbers = #tpu.dot_dimension_numbers<[1], [0], [0], [1], [0, 0, 1, 1], [], []>} : vector<32x32xf32>, vector<32x64xf32>, vector<32x64xf32> -> vector<32x64xf32>
    %c0_5 = arith.constant 0 : index
    %c0_6 = arith.constant 0 : index
    %7 = vector.load %arg4[%c0_5, %c0_6] : memref<1x64xf32, #tpu.memory_space<vmem>>, vector<1x64xf32>
    %8 = vector.broadcast %7 : vector<1x64xf32> to vector<32x64xf32>
    %9 = arith.addf %6, %8 : vector<32x64xf32>
    %cst_7 = arith.constant 0.000000e+00 : f32
    %10 = vector.broadcast %cst_7 : f32 to vector<32x64xf32>
    %11 = arith.maximumf %9, %10 : vector<32x64xf32>
    %c0_8 = arith.constant 0 : index
    %c0_9 = arith.constant 0 : index
    %12 = vector.load %arg5[%c0_8, %c0_9] : memref<64x96xf32, #tpu.memory_space<vmem>>, vector<64x96xf32>
    %cst_10 = arith.constant dense<0.000000e+00> : vector<32x96xf32>
    %13 = tpu.matmul %11, %12, %cst_10 {dimension_numbers = #tpu.dot_dimension_numbers<[1], [0], [0], [1], [0, 0, 1, 1], [], []>} : vector<32x64xf32>, vector<64x96xf32>, vector<32x96xf32> -> vector<32x96xf32>
    %c0_11 = arith.constant 0 : index
    %c0_12 = arith.constant 0 : index
    %14 = vector.load %arg6[%c0_11, %c0_12] : memref<1x96xf32, #tpu.memory_space<vmem>>, vector<1x96xf32>
    %15 = vector.broadcast %14 : vector<1x96xf32> to vector<32x96xf32>
    %16 = arith.addf %13, %15 : vector<32x96xf32>
    %cst_13 = arith.constant 0.000000e+00 : f32
    %17 = vector.broadcast %cst_13 : f32 to vector<32x96xf32>
    %18 = arith.maximumf %16, %17 : vector<32x96xf32>
    %c0_14 = arith.constant 0 : index
    %c0_15 = arith.constant 0 : index
    %19 = vector.load %arg7[%c0_14, %c0_15] : memref<96x96xf32, #tpu.memory_space<vmem>>, vector<96x96xf32>
    %cst_16 = arith.constant dense<0.000000e+00> : vector<32x96xf32>
    %20 = tpu.matmul %18, %19, %cst_16 {dimension_numbers = #tpu.dot_dimension_numbers<[1], [0], [0], [1], [0, 0, 1, 1], [], []>} : vector<32x96xf32>, vector<96x96xf32>, vector<32x96xf32> -> vector<32x96xf32>
    %c0_17 = arith.constant 0 : index
    %c0_18 = arith.constant 0 : index
    %21 = vector.load %arg8[%c0_17, %c0_18] : memref<1x96xf32, #tpu.memory_space<vmem>>, vector<1x96xf32>
    %22 = vector.broadcast %21 : vector<1x96xf32> to vector<32x96xf32>
    %23 = arith.addf %20, %22 : vector<32x96xf32>
    %cst_19 = arith.constant 0.000000e+00 : f32
    %24 = vector.broadcast %cst_19 : f32 to vector<32x96xf32>
    %25 = arith.maximumf %23, %24 : vector<32x96xf32>
    %c0_20 = arith.constant 0 : index
    %c0_21 = arith.constant 0 : index
    %26 = vector.load %arg12[%c0_20, %c0_21] : memref<2x96xf32, #tpu.memory_space<vmem>>, vector<2x96xf32>
    %27 = vector.shape_cast %25 : vector<32x96xf32> to vector<2x16x96xf32>
    %cst_22 = arith.constant dense<0.000000e+00> : vector<2x96xf32>
    %28 = vector.multi_reduction <add>, %27, %cst_22 [1] : vector<2x16x96xf32> to vector<2x96xf32>
    %29 = arith.addf %26, %28 : vector<2x96xf32>
    %c0_23 = arith.constant 0 : index
    %c0_24 = arith.constant 0 : index
    %30 = vector.load %arg12[%c0_23, %c0_24] : memref<2x96xf32, #tpu.memory_space<vmem>>, vector<2x96xf32>
    tpu.vector_store %arg12[%c0_23, %c0_24], %29 {strides = array<i32>} : memref<2x96xf32, #tpu.memory_space<vmem>>, vector<2x96xf32>,
    %c0_i32_25 = arith.constant 0 : i32
    %31 = arith.cmpi eq, %arg1, %c0_i32_25 : i32
    %32 = arith.extui %31 : i1 to i32
    %c0_i32_26 = arith.constant 0 : i32
    %33 = arith.cmpi ne, %32, %c0_i32_26 : i32
    scf.if %33 {
      %c0_27 = arith.constant 0 : index
      %c0_28 = arith.constant 0 : index
      %34 = vector.load %arg12[%c0_27, %c0_28] : memref<2x96xf32, #tpu.memory_space<vmem>>, vector<2x96xf32>
      %cst_29 = arith.constant 6.250000e-02 : f32
      %35 = vector.broadcast %cst_29 : f32 to vector<2x96xf32>
      %36 = arith.mulf %34, %35 : vector<2x96xf32>
      %c0_30 = arith.constant 0 : index
      %c0_31 = arith.constant 0 : index
      %37 = vector.load %arg9[%c0_30, %c0_31] : memref<96x16xf32, #tpu.memory_space<vmem>>, vector<96x16xf32>
      %cst_32 = arith.constant dense<0.000000e+00> : vector<2x16xf32>
      %38 = tpu.matmul %36, %37, %cst_32 {dimension_numbers = #tpu.dot_dimension_numbers<[1], [0], [0], [1], [0, 0, 1, 1], [], []>} : vector<2x96xf32>, vector<96x16xf32>, vector<2x16xf32> -> vector<2x16xf32>
      %c0_33 = arith.constant 0 : index
      %c0_34 = arith.constant 0 : index
      %39 = vector.load %arg10[%c0_33, %c0_34] : memref<1x16xf32, #tpu.memory_space<vmem>>, vector<1x16xf32>
      %40 = vector.broadcast %39 : vector<1x16xf32> to vector<2x16xf32>
      %41 = arith.addf %38, %40 : vector<2x16xf32>
      %c0_35 = arith.constant 0 : index
      %c0_36 = arith.constant 0 : index
      %42 = vector.load %arg11[%c0_35, %c0_36] : memref<2x16xf32, #tpu.memory_space<vmem>>, vector<2x16xf32>
      tpu.vector_store %arg11[%c0_35, %c0_36], %41 {strides = array<i32>} : memref<2x16xf32, #tpu.memory_space<vmem>>, vector<2x16xf32>,
    } else {
    }
    return
  }
  func.func @transform_0(%arg0: i32, %arg1: i32) -> (i32, i32, i32) {
    %c0_i32 = arith.constant 0 : i32
    %c0_i32_0 = arith.constant 0 : i32
    return %arg0, %arg1, %c0_i32 : i32, i32, i32
  }
  func.func @transform_1(%arg0: i32, %arg1: i32) -> (i32, i32) {
    %c0_i32 = arith.constant 0 : i32
    %c0_i32_0 = arith.constant 0 : i32
    %c0_i32_1 = arith.constant 0 : i32
    return %c0_i32, %c0_i32_0 : i32, i32
  }
  func.func @transform_2(%arg0: i32, %arg1: i32) -> (i32, i32) {
    %c0_i32 = arith.constant 0 : i32
    %c0_i32_0 = arith.constant 0 : i32
    %c0_i32_1 = arith.constant 0 : i32
    return %c0_i32, %c0_i32_0 : i32, i32
  }
  func.func @transform_3(%arg0: i32, %arg1: i32) -> (i32, i32) {
    %c0_i32 = arith.constant 0 : i32
    %c0_i32_0 = arith.constant 0 : i32
    %c0_i32_1 = arith.constant 0 : i32
    return %c0_i32, %c0_i32_0 : i32, i32
  }
  func.func @transform_4(%arg0: i32, %arg1: i32) -> (i32, i32) {
    %c0_i32 = arith.constant 0 : i32
    %c0_i32_0 = arith.constant 0 : i32
    %c0_i32_1 = arith.constant 0 : i32
    return %c0_i32, %c0_i32_0 : i32, i32
  }
  func.func @transform_5(%arg0: i32, %arg1: i32) -> (i32, i32) {
    %c0_i32 = arith.constant 0 : i32
    %c0_i32_0 = arith.constant 0 : i32
    %c0_i32_1 = arith.constant 0 : i32
    return %c0_i32, %c0_i32_0 : i32, i32
  }
  func.func @transform_6(%arg0: i32, %arg1: i32) -> (i32, i32) {
    %c0_i32 = arith.constant 0 : i32
    %c0_i32_0 = arith.constant 0 : i32
    %c0_i32_1 = arith.constant 0 : i32
    return %c0_i32, %c0_i32_0 : i32, i32
  }
  func.func @transform_7(%arg0: i32, %arg1: i32) -> (i32, i32) {
    %c0_i32 = arith.constant 0 : i32
    %c0_i32_0 = arith.constant 0 : i32
    %c0_i32_1 = arith.constant 0 : i32
    return %c0_i32, %c0_i32_0 : i32, i32
  }
  func.func @transform_8(%arg0: i32, %arg1: i32) -> (i32, i32) {
    %c0_i32 = arith.constant 0 : i32
    %c0_i32_0 = arith.constant 0 : i32
    %c0_i32_1 = arith.constant 0 : i32
    return %c0_i32, %c0_i32_0 : i32, i32
  }
  func.func @transform_9(%arg0: i32, %arg1: i32) -> (i32, i32) {
    %c0_i32 = arith.constant 0 : i32
    %c0_i32_0 = arith.constant 0 : i32
    return %arg0, %c0_i32 : i32, i32
  }
}

</mosaic_0001>

<bundles_post_ra>
// kernel: tpu_custom_call.1
= control target key start
LH: loop header
LB: loop body
LE: loop exit
PB: predicated region body
PF: predicated region fallthrough
CT: control target
= control target key end

     0   :  { %14 = vsyncpa [#allocation4], 0  ;;  %s999_s0 = inlined_call_operand.hbm [shape: f32[2,16,32], index: 0, kind: input, shape index: {}]   ;;  %s1000_s1 = inlined_call_operand.hbm [shape: f32[32,64], index: 1, kind: input, shape index: {}]   ;;  %s1001_s2 = inlined_call_operand.vmem [shape: f32[1,64], index: 2, kind: input, shape index: {}]   ;;  %s1002_s3 = inlined_call_operand.hbm [shape: f32[64,96], index: 3, kind: input, shape index: {}]   ;;  %s1003_s4 = inlined_call_operand.vmem [shape: f32[1,96], index: 4, kind: input, shape index: {}]   ;;  %s1004_s5 = inlined_call_operand.vmem [shape: f32[96,96], index: 5, kind: input, shape index: {}]   ;;  %s1005_s6 = inlined_call_operand.vmem [shape: f32[1,96], index: 6, kind: input, shape index: {}]   ;;  %s1006_s7 = inlined_call_operand.vmem [shape: f32[96,16], index: 7, kind: input, shape index: {}]   ;;  %s1007_s8 = inlined_call_operand.vmem [shape: f32[1,16], index: 8, kind: input, shape index: {}]   ;;  %s1008_s9 = inlined_call_operand.hbm [shape: f32[2,16], index: 9, kind: output, shape index: {}]  }
   0x1   :  { %15 = vsyncpa [#allocation7], 0 }
   0x2   :  { %16 = vsyncpa [#allocation5], 0  ;;  %s830_s30 = smov [#allocation6]   ;;  %s831_s11 = smov [#allocation3]  }
   0x3   :  { %s34_s10 = sshll.u32 %s830_s30, 4  ;;  %s22_s12 = sshll.u32 %s831_s11, 4  ;;  %s35_s10 = int_to_ptr.vmem [resolvable:$true] %s34_s10  ;;  %s23_s12 = int_to_ptr.vmem [resolvable:$true] %s22_s12 }
   0x4   :  { %s752_s13 = scalar_lea.vmem %s35_s10, 512  ;;  %p757_p1 = scmp.lt.s32.totalorder %s35_s10, %s35_s10 }
   0x5   :  { %p753_p0 = scmp.ne.s32.totalorder %s35_s10, %s752_s13  ;;  %p758_p2 = scmp.lt.s32.totalorder %s752_s13, %s752_s13 }
   0x7   :  { %p759_p3 = por %p758_p2, %p757_p1 }
   0x9   :  { %p760_p4 = pnand %p759_p3, %p753_p0 }
   0xb   :  { %763 = shalt.err (!%p760_p4)
}
   0xc   :  { %s832_s14 = smov 128   ;;  %s833_s15 = smov 8  }
   0xd   :  { %40 = dma.hbm_to_vmem [thread:$0]  %s1000_s1, 512, %s35_s10, [#allocation7], %s832_s14, %s832_s14, %s833_s15  }
   0xe   :  { %s772_s18 = scalar_lea.vmem %s23_s12, 512  ;;  %p777_p6 = scmp.lt.s32.totalorder %s23_s12, %s23_s12 }
   0xf   :  { %p773_p5 = scmp.ne.s32.totalorder %s23_s12, %s772_s18  ;;  %p778_p7 = scmp.lt.s32.totalorder %s772_s18, %s772_s18 }
  0x11   :  { %p779_p8 = por %p778_p7, %p777_p6 }
  0x13   :  { %p780_p9 = pnand %p779_p8, %p773_p5 }
  0x15   :  { %783 = shalt.err (!%p780_p9)
}
  0x16   :  { %28 = dma.hbm_to_vmem [thread:$0]  %s999_s0, 512, %s23_s12, [#allocation4], %s832_s14, %s832_s14, %s833_s15  }
  0x17   :  { %s834_s21 = smov [#allocation8]  }
  0x18   :  { %s48_s22 = sshll.u32 %s834_s21, 4  ;;  %s49_s22 = int_to_ptr.vmem [resolvable:$true] %s48_s22 }
  0x19   :  { %s792_s23 = scalar_lea.vmem %s49_s22, 1024  ;;  %p797_p11 = scmp.lt.s32.totalorder %s49_s22, %s49_s22 }
  0x1a   :  { %p793_p10 = scmp.ne.s32.totalorder %s49_s22, %s792_s23  ;;  %p798_p12 = scmp.lt.s32.totalorder %s792_s23, %s792_s23 }
  0x1c   :  { %p799_p13 = por %p798_p12, %p797_p11 }
  0x1e   :  { %p800_p0 = pnand %p799_p13, %p793_p10 }
  0x20   :  { %803 = shalt.err (!%p800_p0)
}
  0x21   :  { %54 = dma.hbm_to_vmem [thread:$0]  %s1002_s3, 1024, %s49_s22, [#allocation7], %s832_s14, %s832_s14, %s833_s15  }
  0x22   :  { %824 = dma.done.wait [#allocation4], 512  }
  0x23   :  { %825 = vsyncadd [#allocation4], 4294966784 }
  0x24   :  { %826 = dma.done.wait [#allocation7], 1536  }
  0x25   :  { %827 = vsyncadd [#allocation7], 4294965760  ;;  %vm95_vm0 = vcmask 261120   ;;  %v87_v0 = vld [vmem:[#allocation6 + $0x18] sm:$0xff]  ;;  %v86_v1 = vld [vmem:[#allocation6 + $0x10] sm:$0xff]  ;;  %vm212_vm1 = vcmask 523264  }
  0x26   :  { %643 = vmatprep.subr.mxu0 %v87_v0  ;;  %v80_v2 = vld [vmem:[#allocation3] sm:$0xff]  ;;  %v85_v3 = vld [vmem:[#allocation6 + $0x8] sm:$0xff]  ;;  %v204_v4 = vld [vmem:[#allocation8 + $0x38] sm:$0xff]  ;;  %vm333_vm2 = vcmask 785408   ;;  %v835_v54 = vmov 0.0   ;;  %vm78_vm3 = vcmask 779264  }
  0x27   :  { %644 = vmatpush3.msra.mxu0 %v87_v0  ;;  %651 = vmatprep.mubr.msk.f32.mxu0 %vm95_vm0, %v80_v2  ;;  %v203_v5 = vld [vmem:[#allocation8 + $0x30] sm:$0xff]  ;;  %v84_v6 = vld [vmem:[#allocation6] sm:$0xff]  ;;  %v202_v7 = vld [vmem:[#allocation8 + $0x28] sm:$0xff]  ;;  %79 = vst.msk [vmem:[#allocation2] sm:$0x3] %vm78_vm3, %v835_v54  ;;  %vm836_vm4 = vmmov 0  }
  0x28   :  { %645 = vmatprep.subr.mxu0 %v86_v1  ;;  %657 = vmatprep.subr.mxu1 %v204_v4  ;;  %v81_v8 = vld [vmem:[#allocation3 + $0x8] sm:$0xff]  ;;  %v201_v9 = vld [vmem:[#allocation8 + $0x20] sm:$0xff]  ;;  %v82_v10 = vld [vmem:[#allocation3 + $0x10] sm:$0xff]  ;;  %vm456_vm5 = vcmask 1041409   ;;  %s837_s25 = smov [#allocation9]   ;;  %vm559_vm6 = vcmask 123904  }
  0x29   :  { %646 = vmatpush3.msra.mxu0 %v86_v1  ;;  %658 = vmatpush3.msra.mxu1 %v204_v4  ;;  %v83_v11 = vld [vmem:[#allocation3 + $0x18] sm:$0xff]  ;;  %v199_v13 = vld [vmem:[#allocation8 + $0x10] sm:$0xff]  ;;  %v198_v14 = vld [vmem:[#allocation8 + $0x8] sm:$0xff] }
  0x2a   :  { %647 = vmatprep.subr.mxu0 %v85_v3  ;;  %659 = vmatprep.subr.mxu1 %v203_v5  ;;  %v200_v12 = vld [vmem:[#allocation8 + $0x18] sm:$0xff]  ;;  %v197_v15 = vld [vmem:[#allocation8] sm:$0xff]  ;;  %v324_v17 = vld [vmem:[%s1004_s5 + $0x50] sm:$0xff] }
  0x2b   :  { %648 = vmatpush3.msra.mxu0 %v85_v3  ;;  %660 = vmatpush3.msra.mxu1 %v203_v5  ;;  %v325_v16 = vld [vmem:[%s1004_s5 + $0x58] sm:$0xff]  ;;  %v323_v18 = vld [vmem:[%s1004_s5 + $0x48] sm:$0xff]  ;;  %v322_v19 = vld [vmem:[%s1004_s5 + $0x40] sm:$0xff] }
  0x2c   :  { %649 = vmatprep.subr.mxu0 %v84_v6  ;;  %661 = vmatprep.subr.mxu1 %v202_v7  ;;  %v321_v20 = vld [vmem:[%s1004_s5 + $0x38] sm:$0xff]  ;;  %v320_v21 = vld [vmem:[%s1004_s5 + $0x30] sm:$0xff]  ;;  %v319_v22 = vld [vmem:[%s1004_s5 + $0x28] sm:$0xff] }
  0x2d   :  { %650 = vmatpush3.msra.mxu0 %v84_v6  ;;  %662 = vmatpush3.msra.mxu1 %v202_v7  ;;  %v318_v23 = vld [vmem:[%s1004_s5 + $0x20] sm:$0xff]  ;;  %v317_v37 = vld [vmem:[%s1004_s5 + $0x18] sm:$0xff]  ;;  %v316_v38 = vld [vmem:[%s1004_s5 + $0x10] sm:$0xff] }
  0x2e   :  { %652 = vmatmul.mubr.msk.f32.vlgmr.msra.gmra.mxu0 %vm95_vm0, %v81_v8  ;;  %663 = vmatprep.subr.mxu1 %v201_v9  ;;  %v577_v24 = vld [vmem:[%s1001_s2] ss:$0 sm:$0xff]  ;;  %v315_v39 = vld [vmem:[%s1004_s5 + $0x8] sm:$0xff]  ;;  %v478_v55 = vld [vmem:[%s1006_s7 + $0x58] sm:$0xff] }
  0x2f   :  { %654 = vmatprep.mubr.msk.f32.mxu0 %vm95_vm0, %v82_v10  ;;  %664 = vmatpush3.msra.mxu1 %v201_v9  ;;  %v314_v40 = vld [vmem:[%s1004_s5] sm:$0xff]  ;;  %v477_v56 = vld [vmem:[%s1006_s7 + $0x50] sm:$0xff]  ;;  %v476_v57 = vld [vmem:[%s1006_s7 + $0x48] sm:$0xff] }
  0x30   :  { %665 = vmatprep.subr.mxu1 %v200_v12  ;;  %679 = vmatprep.subr.mxu0 %v325_v16  ;;  %v582_v41 = vld [vmem:[%s1003_s4] ss:$0 sm:$0xff]  ;;  %v474_v59 = vld [vmem:[%s1006_s7 + $0x38] sm:$0xff]  ;;  %v473_v60 = vld [vmem:[%s1006_s7 + $0x30] sm:$0xff]  ;;  %s567_s4 = sshll.u32 %s837_s25, 4  ;;  %s568_s4 = int_to_ptr.vmem [resolvable:$true] %s567_s4 }
  0x31   :  { %666 = vmatpush3.msra.mxu1 %v200_v12  ;;  %680 = vmatpush3.msra.mxu0 %v325_v16  ;;  %v475_v58 = vld [vmem:[%s1006_s7 + $0x40] sm:$0xff]  ;;  %v472_v61 = vld [vmem:[%s1006_s7 + $0x28] sm:$0xff]  ;;  %v470_v63 = vld [vmem:[%s1006_s7 + $0x18] sm:$0xff]  ;;  %s804_s5 = scalar_lea.vmem %s568_s4, 32  ;;  %p809_p2 = scmp.lt.s32.totalorder %s568_s4, %s568_s4 }
  0x32   :  { %655 = vmatmul.mubr.msk.f32.gmra.mxu0 %vm95_vm0, %v83_v11  ;;  %667 = vmatprep.subr.mxu1 %v199_v13  ;;  %v471_v62 = vld [vmem:[%s1006_s7 + $0x20] sm:$0xff]  ;;  %v469_v0 = vld [vmem:[%s1006_s7 + $0x10] sm:$0xff]  ;;  %v468_v1 = vld [vmem:[%s1006_s7 + $0x8] sm:$0xff]  ;;  %p805_p1 = scmp.ne.s32.totalorder %s568_s4, %s804_s5  ;;  %p810_p3 = scmp.lt.s32.totalorder %s804_s5, %s804_s5 }
  0x33   :  { %668 = vmatpush3.msra.mxu1 %v199_v13  ;;  %681 = vmatprep.subr.mxu0 %v324_v17  ;;  %v467_v2 = vld [vmem:[%s1006_s7] sm:$0xff] }
  0x34   :  { %669 = vmatprep.subr.mxu1 %v198_v14  ;;  %682 = vmatpush3.msra.mxu0 %v324_v17  ;;  %v587_v3 = vld [vmem:[%s1005_s6] ss:$0 sm:$0xff]  ;;  %p811_p4 = por %p810_p3, %p809_p2 }
  0x35   :  { %670 = vmatpush3.msra.mxu1 %v198_v14  ;;  %683 = vmatprep.subr.mxu0 %v323_v18 }
  0x36   :  { %671 = vmatprep.subr.mxu1 %v197_v15  ;;  %684 = vmatpush3.msra.mxu0 %v323_v18  ;;  %p812_p5 = pnand %p811_p4, %p805_p1 }
  0x37   :  { %672 = vmatpush3.msra.mxu1 %v197_v15  ;;  %685 = vmatprep.subr.mxu0 %v322_v19 }
  0x38   :  { %686 = vmatpush3.msra.mxu0 %v322_v19  ;;  %709 = vmatprep.subr.mxu1 %v835_v54 }
  0x39   :  { %687 = vmatprep.subr.mxu0 %v321_v20 }
  0x3a   :  { %688 = vmatpush3.msra.mxu0 %v321_v20 }
  0x3b   :  { %689 = vmatprep.subr.mxu0 %v320_v21 }
  0x3c   :  { %690 = vmatpush3.msra.mxu0 %v320_v21 }
  0x3d   :  { %691 = vmatprep.subr.mxu0 %v319_v22 }
  0x3e   :  { %692 = vmatpush3.msra.mxu0 %v319_v22 }
  0x3f   :  { %693 = vmatprep.subr.mxu0 %v318_v23 }
  0x40   :  { %694 = vmatpush3.msra.mxu0 %v318_v23 }
  0x41   :  { %695 = vmatprep.subr.mxu0 %v317_v37 }
  0x42   :  { %696 = vmatpush3.msra.mxu0 %v317_v37 }
  0x43   :  { %697 = vmatprep.subr.mxu0 %v316_v38 }
  0x44   :  { %698 = vmatpush3.msra.mxu0 %v316_v38 }
  0x45   :  { %699 = vmatprep.subr.mxu0 %v315_v39 }
  0x46   :  { %700 = vmatpush3.msra.mxu0 %v315_v39  ;;  %v592_v39 = vld [vmem:[%s1007_s8] ss:$0 sm:$0xff] }
  0x47   :  { %701 = vmatprep.subr.mxu0 %v314_v40 }
  0x48   :  { %702 = vmatpush3.msra.mxu0 %v314_v40 }
  0xee   :  { %v653_v25 = vpop.f32.mrf.mxu0 }
  0xef   :  { %v180_v26 = vadd.f32 %v653_v25, %v577_v24 }
  0xf0   :  { %v174_v27 = vpop.f32.mrf.mxu0 }
  0xf1   :  { %v175_v28 = vadd.f32 %v577_v24, %v174_v27  ;;  %v194_v31 = vmax.f32 %v180_v26, 0.0 }
  0xf2   :  { %v656_v29 = vpop.f32.mrf.mxu0 }
  0xf3   :  { %v193_v30 = vmax.f32 %v175_v28, 0.0  ;;  %v190_v32 = vadd.f32 %v656_v29, %v577_v24 }
  0xf4   :  { %v184_v33 = vpop.f32.mrf.mxu0 }
  0xf5   :  { %v185_v34 = vadd.f32 %v577_v24, %v184_v33  ;;  %673 = vmatprep.mubr.msk.f32.mxu1 %vm212_vm1, %v193_v30  ;;  %v196_v36 = vmax.f32 %v190_v32, 0.0  ;;  %v435_v33 = vld [vmem:[#allocation2] sm:$0x3] }
  0xf6   :  { %674 = vmatmul.mubr.msk.f32.vlgmr.msra.gmra.mxu1 %vm212_vm1, %v194_v31 }
  0xf7   :  { %v195_v35 = vmax.f32 %v185_v34, 0.0  ;;  %710 = vmatpush3.msra.mxu1 %v478_v55 }
  0xf8   :  { %711 = vmatprep.subr.mxu1 %v835_v54 }
  0xf9   :  { %676 = vmatprep.mubr.msk.f32.mxu1 %vm212_vm1, %v195_v35  ;;  %712 = vmatpush3.msra.mxu1 %v477_v56 }
  0xfa   :  { %677 = vmatmul.mubr.msk.f32.gmra.mxu1 %vm212_vm1, %v196_v36  ;;  %713 = vmatprep.subr.mxu1 %v835_v54 }
  0xfb   :  { %714 = vmatpush3.msra.mxu1 %v476_v57  ;;  %733 = vmatprep.mubr.msk.f32.mxu1 %vm836_vm4, %v835_v54 }
  0xfc   :  { %715 = vmatprep.subr.mxu1 %v835_v54 }
  0xfd   :  { %716 = vmatpush3.msra.mxu1 %v475_v58 }
  0xfe   :  { %717 = vmatprep.subr.mxu1 %v835_v54 }
  0xff   :  { %718 = vmatpush3.msra.mxu1 %v474_v59 }
 0x100   :  { %719 = vmatprep.subr.mxu1 %v835_v54 }
 0x101   :  { %720 = vmatpush3.msra.mxu1 %v473_v60 }
 0x102   :  { %721 = vmatprep.subr.mxu1 %v835_v54 }
 0x103   :  { %722 = vmatpush3.msra.mxu1 %v472_v61 }
 0x104   :  { %723 = vmatprep.subr.mxu1 %v835_v54 }
 0x105   :  { %724 = vmatpush3.msra.mxu1 %v471_v62 }
 0x106   :  { %725 = vmatprep.subr.mxu1 %v835_v54 }
 0x107   :  { %726 = vmatpush3.msra.mxu1 %v470_v63 }
 0x108   :  { %727 = vmatprep.subr.mxu1 %v835_v54 }
 0x109   :  { %728 = vmatpush3.msra.mxu1 %v469_v0 }
 0x10a   :  { %729 = vmatprep.subr.mxu1 %v835_v54 }
 0x10b   :  { %730 = vmatpush3.msra.mxu1 %v468_v1 }
 0x10c   :  { %731 = vmatprep.subr.mxu1 %v835_v54 }
 0x10d   :  { %732 = vmatpush3.msra.mxu1 %v467_v2 }
 0x1b6   :  { %v675_v42 = vpop.f32.mrf.mxu1 }
 0x1b7   :  { %v297_v43 = vadd.f32 %v675_v42, %v582_v41 }
 0x1b8   :  { %v291_v44 = vpop.f32.mrf.mxu1 }
 0x1b9   :  { %v292_v45 = vadd.f32 %v582_v41, %v291_v44  ;;  %v311_v48 = vmax.f32 %v297_v43, 0.0 }
 0x1ba   :  { %v678_v46 = vpop.f32.mrf.mxu1 }
 0x1bb   :  { %v310_v47 = vmax.f32 %v292_v45, 0.0  ;;  %v307_v49 = vadd.f32 %v678_v46, %v582_v41 }
 0x1bc   :  { %v301_v50 = vpop.f32.mrf.mxu1 }
 0x1bd   :  { %v302_v51 = vadd.f32 %v582_v41, %v301_v50  ;;  %703 = vmatprep.mubr.msk.f32.mxu0 %vm333_vm2, %v310_v47  ;;  %v313_v53 = vmax.f32 %v307_v49, 0.0 }
 0x1be   :  { %704 = vmatmul.mubr.msk.f32.vlgmr.msra.gmra.mxu0 %vm333_vm2, %v311_v48 }
 0x1bf   :  { %v312_v52 = vmax.f32 %v302_v51, 0.0 }
 0x1c1   :  { %706 = vmatprep.mubr.msk.f32.mxu0 %vm333_vm2, %v312_v52 }
 0x1c2   :  { %707 = vmatmul.mubr.msk.f32.gmra.mxu0 %vm333_vm2, %v313_v53 }
 0x27e   :  { %v705_v4 = vpop.f32.mrf.mxu0 }
 0x27f   :  { %v418_v5 = vadd.f32 %v705_v4, %v587_v3 }
 0x280   :  { %v412_v6 = vpop.f32.mrf.mxu0 }
 0x281   :  { %v432_v7 = vmax.f32 %v418_v5, 0.0  ;;  %v413_v8 = vadd.f32 %v587_v3, %v412_v6 }
 0x282   :  { %v708_v9 = vpop.f32.mrf.mxu0 }
 0x283   :  { %v431_v10 = vmax.f32 %v413_v8, 0.0  ;;  %v428_v11 = vadd.f32 %v708_v9, %v587_v3  ;;  %v437_v13 = vsel %vm333_vm2, %v432_v7, 0.0 }
 0x284   :  { %v422_v12 = vpop.f32.mrf.mxu0 }
 0x285   :  { %v436_v14 = vsel %vm333_vm2, %v431_v10, 0.0  ;;  %v434_v15 = vmax.f32 %v428_v11, 0.0  ;;  %v423_v16 = vadd.f32 %v587_v3, %v422_v12 }
 0x286   :  { %v438_v17 = vadd.f32 %v437_v13, %v436_v14 }
 0x287   :  { %v433_v18 = vmax.f32 %v423_v16, 0.0  ;;  %v446_v20 = vsel %vm333_vm2, %v434_v15, 0.0 }
 0x288   :  { %v439_v19 = vrot.slane %v438_v17, 4 }
 0x289   :  { %v445_v21 = vsel %vm333_vm2, %v433_v18, 0.0 }
 0x28a   :  { %v440_v22 = vadd.f32 %v439_v19, %v438_v17  ;;  %v447_v23 = vadd.f32 %v446_v20, %v445_v21 }
 0x28c   :  { %v441_v24 = vrot.slane %v440_v22, 2  ;;  %v448_v25 = vrot.slane %v447_v23, 4 }
 0x28e   :  { %v442_v26 = vadd.f32 %v441_v24, %v440_v22  ;;  %v449_v27 = vadd.f32 %v448_v25, %v447_v23 }
 0x290   :  { %v450_v28 = vrot.slane %v449_v27, 2  ;;  %v443_v29 = vrot.slane %v442_v26, 1 }
 0x292   :  { %v451_v30 = vadd.f32 %v450_v28, %v449_v27  ;;  %v444_v32 = vadd.f32 %v443_v29, %v442_v26 }
 0x294   :  { %v452_v31 = vrot.slane %v451_v30, 1 }
 0x296   :  { %v453_v34 = vadd.f32 %v452_v31, %v451_v30 }
 0x298   :  { %v457_v35 = vsel %vm456_vm5, %v453_v34, %v444_v32 }
 0x299   :  { %v459_v36 = vadd.f32 %v457_v35, %v435_v33 }
 0x29b   :  { %461 = vst.msk [vmem:[#allocation2] sm:$0x3] %vm78_vm3, %v459_v36 }
 0x2a2   :  { %v465_v37 = vld [vmem:[#allocation2] sm:$0x3] }
 0x2a3   :  { %v466_v38 = vmul.f32 0.0625, %v465_v37 }
 0x2a5   :  { %734 = vmatmul.mubr.msk.f32.vlgmr.msra.gmra.mxu1 %vm333_vm2, %v466_v38 }
 0x365   :  { %v555_v40 = vpop.f32.mrf.mxu1 }
 0x366   :  { %v556_v41 = vadd.f32 %v592_v39, %v555_v40 }
 0x367   :  { %v735_v42 = vpop.f32.mrf.mxu1 }
 0x368   :  { %560 = vst.msk [vmem:[#allocation9] sm:$0x3] %vm559_vm6, %v556_v41 }
 0x369   :  { %815 = shalt.err (!%p812_p5)
}
 0x36a   :  { %570 = dma.vmem_to_hbm [thread:$0]  %s568_s4, 32, %s1008_s9, [#allocation5]  }
 0x36b   :  { %828 = dma.done.wait [#allocation5], 32  }
 0x36c   :  { %829 = vsyncadd [#allocation5], 4294967264 }
 0x36d   :  { %574 = vsyncpa [#allocation4], 1 }
 0x36e   :  { %575 = vsyncpa [#allocation7], 1 }
 0x36f   :  { %576 = vsyncpa [#allocation5], 1 }

</bundles_post_ra>
